<compile_context>
chip_gen: v6e
topology: v6e:2x2x1
jax: 0.10.0
libtpu: 0.0.40
codegen_flags: <defaults>
</compile_context>

<pallas_src>
import jax
import jax.numpy as jnp
from jax.experimental import pallas as pl
from jax.experimental.pallas import tpu as pltpu


# ---------------------------------------------------------------------------
# Kernel
# ---------------------------------------------------------------------------
def _make_mlp_policy_kernel(num_layers, out_dim):
    """Fused MLP-policy kernel (transposed, lane-dense layout).

    Ref layout per grid step (all VMEM):
      refs[0]           : x tile              (tile_b, in_dim)
      refs[1 + 2*i]     : W_i  (native layout) (d_out_i, d_in_i)
      refs[2 + 2*i]     : b_i  (column)        (d_out_i, 1)
      refs[-1]          : probs^T tile         (out_dim, tile_b)
    """

    def kernel(*refs):
        x_ref = refs[0]
        probs_ref = refs[-1]
        layer_refs = refs[1:-1]

        # Layer 0: z0^T = W0 @ x^T  (contract W0 axis 1 with x axis 1).
        w0 = layer_refs[0][...]                       # (d0, in_dim)
        b0 = layer_refs[1][...]                       # (d0, 1)
        z = jax.lax.dot_general(
            w0, x_ref[...], (((1,), (1,)), ((), ())),
            preferred_element_type=jnp.float32) + b0   # (d0, tile_b) f32

        # Hidden layers: Sigmoid then next Linear; activations stay (d, tile_b).
        for i in range(1, num_layers):                 # static unroll
            h = jax.nn.sigmoid(z)                      # f32 elementwise
            w = layer_refs[2 * i][...]                 # (d_out, d_in)
            b = layer_refs[2 * i + 1][...]             # (d_out, 1)
            z = jnp.dot(w, h.astype(w.dtype),
                        preferred_element_type=jnp.float32) + b

        # Head: Softmax over out_dim (sublane axis in this layout).
        if out_dim == 2:
            # Exact 2-class softmax: [sigmoid(z0-z1), 1 - sigmoid(z0-z1)].
            p0 = jax.nn.sigmoid(z[0:1, :] - z[1:2, :])          # (1, tile_b)
            probs_ref[0:1, :] = p0.astype(probs_ref.dtype)
            probs_ref[1:2, :] = (1.0 - p0).astype(probs_ref.dtype)
        else:
            m = jnp.max(z, axis=0, keepdims=True)
            e = jnp.exp(z - m)
            s = jnp.sum(e, axis=0, keepdims=True)
            probs_ref[...] = (e / s).astype(probs_ref.dtype)     # exact divide

    return kernel


# ---------------------------------------------------------------------------
# One-time parameter preparation (hoisted out of the per-call path)
# ---------------------------------------------------------------------------
def prepare_params(params, *, dtype=jnp.float32):
    """params: list of (W, b) with W: (d_out, d_in), b: (d_out,) (PyTorch layout).

    Returns kernel-ready params: W kept in native (d_out, d_in) layout (the
    transposed compute layout consumes it directly), bias as an f32 column
    (d_out, 1).  `dtype` controls the weight/x compute dtype (f32 or bf16).
    """
    prepped = []
    for W, b in params:
        W = jnp.asarray(W, dtype)
        bcol = jnp.asarray(b, jnp.float32).reshape(-1, 1)
        prepped.append((W, bcol))
    return prepped


def _choose_tile_b(B, itemsize):
    """Small batches: one grid step.  Large: lane-dense multiples of 128 with
    >= 2 steps (v7x megacore) and multi-hundred-KB x traffic per step."""
    if B <= 2048:
        return B
    target = 4096 if itemsize == 4 else 8192
    tile = min(target, (B // 2) // 128 * 128)
    while tile >= 128:
        if B % tile == 0:
            return tile
        tile -= 128
    return B


def _vmem_limit_bytes(tile_b, in_dim, out_dim, prepared_params, x_itemsize):
    x_blk = tile_b * in_dim * x_itemsize
    o_blk = out_dim * tile_b * 4
    p_bytes = sum(W.size * W.dtype.itemsize + b.size * 4
                  for W, b in prepared_params)
    max_d = max(max(W.shape) for W, _ in prepared_params)
    act = 4 * max_d * tile_b * 4                 # a few live f32 activations
    need = 2 * (x_blk + o_blk) + 2 * p_bytes + act + (4 << 20)
    return int(min(max(need, 16 << 20), 48 << 20))


# ---------------------------------------------------------------------------
# Wrapper
# ---------------------------------------------------------------------------
def mlp_policy_forward(x, prepared_params, *, tile_b=None):
    """Pallas equivalent of MLPPolicy.forward.

    x:               (batch, input_dim) float array
    prepared_params: output of prepare_params()
    Returns probs: (batch, output_dim) float32, rows sum to 1.
    """
    num_layers = len(prepared_params)
    assert num_layers >= 1, "MLPPolicy needs at least one Linear layer"
    B, in_dim = x.shape
    out_dim = prepared_params[-1][0].shape[0]

    x_dtype = prepared_params[0][0].dtype        # match weight compute dtype
    x = jnp.asarray(x, x_dtype)
    itemsize = jnp.dtype(x_dtype).itemsize

    if tile_b is None:
        tile_b = _choose_tile_b(B, itemsize)
    # x block sublane axis and probs^T lane axis constraints.
    assert tile_b == B or (tile_b % 128 == 0 and B % tile_b == 0), (
        "tile_b must equal B or be a multiple of 128 dividing B")

    flat_inputs = [x]
    in_specs = [pl.BlockSpec((tile_b, in_dim), lambda i: (i, 0))]
    for (W, bcol) in prepared_params:
        d_out, d_in = W.shape
        flat_inputs.append(W)
        flat_inputs.append(bcol)
        # Full-array blocks, constant index_map -> fetched once, VMEM-resident.
        in_specs.append(pl.BlockSpec((d_out, d_in), lambda i: (0, 0)))
        in_specs.append(pl.BlockSpec((d_out, 1), lambda i: (0, 0)))

    grid = (pl.cdiv(B, tile_b),)
    probs_t = pl.pallas_call(
        _make_mlp_policy_kernel(num_layers, out_dim),
        out_shape=jax.ShapeDtypeStruct((out_dim, B), jnp.float32),
        grid=grid,
        in_specs=in_specs,
        out_specs=pl.BlockSpec((out_dim, tile_b), lambda i: (0, i)),
        compiler_params=pltpu.CompilerParams(
            dimension_semantics=("parallel",),
            vmem_limit_bytes=_vmem_limit_bytes(
                tile_b, in_dim, out_dim, prepared_params, itemsize)),
    )(*flat_inputs)
    return probs_t.T                              # back to (batch, out_dim)


# ---------------------------------------------------------------------------
# Reference + init (pure JAX, PyTorch semantics)
# ---------------------------------------------------------------------------
def _reference_forward(x, params):
    h = jnp.asarray(x, jnp.float32)
    for i, (W, b) in enumerate(params):
        z = h @ jnp.asarray(W, jnp.float32).T + jnp.asarray(b, jnp.float32)
        h = jax.nn.sigmoid(z) if i < len(params) - 1 else jax.nn.softmax(z, axis=1)
    return h


def init_params(key, input_dim, hidden_dims, output_dim):
    """PyTorch nn.Linear default init: U(-1/sqrt(fan_in), 1/sqrt(fan_in))."""
    dims = [input_dim] + list(hidden_dims) + [output_dim]
    n = len(dims) - 1
    keys = jax.random.split(key, 2 * n)
    params = []
    for i in range(n):
        s = 1.0 / jnp.sqrt(jnp.float32(dims[i]))
        W = jax.random.uniform(keys[2 * i], (dims[i + 1], dims[i]),
                               jnp.float32, -s, s)
        b = jax.random.uniform(keys[2 * i + 1], (dims[i + 1],),
                               jnp.float32, -s, s)
        params.append((W, b))
    return params


if __name__ == "__main__":
    batch, input_dim, hidden_dims, output_dim = 8, 16, [32, 32], 2

    key = jax.random.PRNGKey(0)
    kx, kp = jax.random.split(key)
    x = jax.random.normal(kx, (batch, input_dim), jnp.float32)
    params = init_params(kp, input_dim, hidden_dims, output_dim)
    ref = _reference_forward(x, params)

    # f32 path (default): exact 2-class head, rows sum to 1 to f32 precision.
    prep_f32 = prepare_params(params, dtype=jnp.float32)
    probs = mlp_policy_forward(x, prep_f32)
    jax.block_until_ready(probs)
    assert probs.shape == (batch, output_dim)
    assert jnp.allclose(probs, ref, atol=2e-3, rtol=2e-3)
    assert jnp.allclose(jnp.sum(probs, axis=1), 1.0, atol=1e-5)

    # bf16 input/weight path: halves x HBM traffic; activation math stays f32.
    prep_bf16 = prepare_params(params, dtype=jnp.bfloat16)
    probs_bf16 = mlp_policy_forward(x, prep_bf16)
    jax.block_until_ready(probs_bf16)
    assert jnp.allclose(probs_bf16, ref, atol=5e-2, rtol=5e-2)
    assert jnp.allclose(jnp.sum(probs_bf16, axis=1), 1.0, atol=1e-5)

    print("KERNEL_OK")
</pallas_src>

<mosaic_0001>
module attributes {stable_mosaic.version = 11 : i64} {
  func.func @kernel(%arg0: i32, %arg1: memref<8x16xf32, #tpu.memory_space<vmem>>, %arg2: memref<32x16xf32, #tpu.memory_space<vmem>>, %arg3: memref<32x1xf32, #tpu.memory_space<vmem>>, %arg4: memref<32x32xf32, #tpu.memory_space<vmem>>, %arg5: memref<32x1xf32, #tpu.memory_space<vmem>>, %arg6: memref<2x32xf32, #tpu.memory_space<vmem>>, %arg7: memref<2x1xf32, #tpu.memory_space<vmem>>, %arg8: memref<2x8xf32, #tpu.memory_space<vmem>>) attributes {dimension_semantics = [#tpu.dimension_semantics<parallel>], iteration_bounds = array<i64: 1>, scalar_prefetch = 0 : i64, scratch_operands = 0 : i64, tpu.core_type = #tpu.core_type<tc>, window_params = [{transform_indices = @transform_0, window_bounds = array<i64: 8, 16>}, {pipeline_mode = #tpu.pipeline_mode<synchronous>, transform_indices = @transform_1, window_bounds = array<i64: 32, 16>}, {pipeline_mode = #tpu.pipeline_mode<synchronous>, transform_indices = @transform_2, window_bounds = array<i64: 32, 1>}, {pipeline_mode = #tpu.pipeline_mode<synchronous>, transform_indices = @transform_3, window_bounds = array<i64: 32, 32>}, {pipeline_mode = #tpu.pipeline_mode<synchronous>, transform_indices = @transform_4, window_bounds = array<i64: 32, 1>}, {pipeline_mode = #tpu.pipeline_mode<synchronous>, transform_indices = @transform_5, window_bounds = array<i64: 2, 32>}, {pipeline_mode = #tpu.pipeline_mode<synchronous>, transform_indices = @transform_6, window_bounds = array<i64: 2, 1>}, {transform_indices = @transform_7, window_bounds = array<i64: 2, 8>}]} {
    %c0 = arith.constant 0 : index
    %c0_0 = arith.constant 0 : index
    %0 = vector.load %arg2[%c0, %c0_0] : memref<32x16xf32, #tpu.memory_space<vmem>>, vector<32x16xf32>
    %c0_1 = arith.constant 0 : index
    %c0_2 = arith.constant 0 : index
    %1 = vector.load %arg3[%c0_1, %c0_2] : memref<32x1xf32, #tpu.memory_space<vmem>>, vector<32x1xf32>
    %c0_3 = arith.constant 0 : index
    %c0_4 = arith.constant 0 : index
    %2 = vector.load %arg1[%c0_3, %c0_4] : memref<8x16xf32, #tpu.memory_space<vmem>>, vector<8x16xf32>
    %cst = arith.constant dense<0.000000e+00> : vector<32x8xf32>
    %3 = tpu.matmul %0, %2, %cst {dimension_numbers = #tpu.dot_dimension_numbers<[1], [1], [0], [0], [0, 0, 1, 0], [], []>} : vector<32x16xf32>, vector<8x16xf32>, vector<32x8xf32> -> vector<32x8xf32>
    %4 = vector.broadcast %1 : vector<32x1xf32> to vector<32x8xf32>
    %5 = arith.addf %3, %4 : vector<32x8xf32>
    %6 = arith.negf %5 : vector<32x8xf32>
    %7 = math.exp %6 : vector<32x8xf32>
    %cst_5 = arith.constant 1.000000e+00 : f32
    %8 = vector.broadcast %cst_5 : f32 to vector<32x8xf32>
    %9 = arith.addf %8, %7 : vector<32x8xf32>
    %10 = arith.divf %8, %9 : vector<32x8xf32>
    %c0_6 = arith.constant 0 : index
    %c0_7 = arith.constant 0 : index
    %11 = vector.load %arg4[%c0_6, %c0_7] : memref<32x32xf32, #tpu.memory_space<vmem>>, vector<32x32xf32>
    %c0_8 = arith.constant 0 : index
    %c0_9 = arith.constant 0 : index
    %12 = vector.load %arg5[%c0_8, %c0_9] : memref<32x1xf32, #tpu.memory_space<vmem>>, vector<32x1xf32>
    %cst_10 = arith.constant dense<0.000000e+00> : vector<32x8xf32>
    %13 = tpu.matmul %11, %10, %cst_10 {dimension_numbers = #tpu.dot_dimension_numbers<[1], [0], [0], [1], [0, 0, 1, 1], [], []>} : vector<32x32xf32>, vector<32x8xf32>, vector<32x8xf32> -> vector<32x8xf32>
    %14 = vector.broadcast %12 : vector<32x1xf32> to vector<32x8xf32>
    %15 = arith.addf %13, %14 : vector<32x8xf32>
    %16 = arith.negf %15 : vector<32x8xf32>
    %17 = math.exp %16 : vector<32x8xf32>
    %cst_11 = arith.constant 1.000000e+00 : f32
    %18 = vector.broadcast %cst_11 : f32 to vector<32x8xf32>
    %19 = arith.addf %18, %17 : vector<32x8xf32>
    %20 = arith.divf %18, %19 : vector<32x8xf32>
    %c0_12 = arith.constant 0 : index
    %c0_13 = arith.constant 0 : index
    %21 = vector.load %arg6[%c0_12, %c0_13] : memref<2x32xf32, #tpu.memory_space<vmem>>, vector<2x32xf32>
    %c0_14 = arith.constant 0 : index
    %c0_15 = arith.constant 0 : index
    %22 = vector.load %arg7[%c0_14, %c0_15] : memref<2x1xf32, #tpu.memory_space<vmem>>, vector<2x1xf32>
    %cst_16 = arith.constant dense<0.000000e+00> : vector<2x8xf32>
    %23 = tpu.matmul %21, %20, %cst_16 {dimension_numbers = #tpu.dot_dimension_numbers<[1], [0], [0], [1], [0, 0, 1, 1], [], []>} : vector<2x32xf32>, vector<32x8xf32>, vector<2x8xf32> -> vector<2x8xf32>
    %24 = vector.broadcast %22 : vector<2x1xf32> to vector<2x8xf32>
    %25 = arith.addf %23, %24 : vector<2x8xf32>
    %26 = vector.extract_strided_slice %25 {offsets = [0, 0], sizes = [1, 8], strides = [1, 1]} : vector<2x8xf32> to vector<1x8xf32>
    %27 = vector.extract_strided_slice %25 {offsets = [1, 0], sizes = [1, 8], strides = [1, 1]} : vector<2x8xf32> to vector<1x8xf32>
    %28 = arith.subf %26, %27 : vector<1x8xf32>
    %29 = arith.negf %28 : vector<1x8xf32>
    %30 = math.exp %29 : vector<1x8xf32>
    %cst_17 = arith.constant 1.000000e+00 : f32
    %31 = vector.broadcast %cst_17 : f32 to vector<1x8xf32>
    %32 = arith.addf %31, %30 : vector<1x8xf32>
    %33 = arith.divf %31, %32 : vector<1x8xf32>
    %c0_18 = arith.constant 0 : index
    %c0_19 = arith.constant 0 : index
    %34 = vector.load %arg8[%c0_18, %c0_19] : memref<2x8xf32, #tpu.memory_space<vmem>>, vector<1x8xf32>
    tpu.vector_store %arg8[%c0_18, %c0_19], %33 {strides = array<i32>} : memref<2x8xf32, #tpu.memory_space<vmem>>, vector<1x8xf32>,
    %cst_20 = arith.constant 1.000000e+00 : f32
    %35 = vector.broadcast %cst_20 : f32 to vector<1x8xf32>
    %36 = arith.subf %35, %33 : vector<1x8xf32>
    %c1 = arith.constant 1 : index
    %c0_21 = arith.constant 0 : index
    %37 = vector.load %arg8[%c1, %c0_21] : memref<2x8xf32, #tpu.memory_space<vmem>>, vector<1x8xf32>
    tpu.vector_store %arg8[%c1, %c0_21], %36 {strides = array<i32>} : memref<2x8xf32, #tpu.memory_space<vmem>>, vector<1x8xf32>,
    return
  }
  func.func @transform_0(%arg0: i32) -> (i32, i32) {
    %c0_i32 = arith.constant 0 : i32
    %c0_i32_0 = arith.constant 0 : i32
    return %arg0, %c0_i32 : i32, i32
  }
  func.func @transform_1(%arg0: i32) -> (i32, i32) {
    %c0_i32 = arith.constant 0 : i32
    %c0_i32_0 = arith.constant 0 : i32
    %c0_i32_1 = arith.constant 0 : i32
    return %c0_i32, %c0_i32_0 : i32, i32
  }
  func.func @transform_2(%arg0: i32) -> (i32, i32) {
    %c0_i32 = arith.constant 0 : i32
    %c0_i32_0 = arith.constant 0 : i32
    %c0_i32_1 = arith.constant 0 : i32
    return %c0_i32, %c0_i32_0 : i32, i32
  }
  func.func @transform_3(%arg0: i32) -> (i32, i32) {
    %c0_i32 = arith.constant 0 : i32
    %c0_i32_0 = arith.constant 0 : i32
    %c0_i32_1 = arith.constant 0 : i32
    return %c0_i32, %c0_i32_0 : i32, i32
  }
  func.func @transform_4(%arg0: i32) -> (i32, i32) {
    %c0_i32 = arith.constant 0 : i32
    %c0_i32_0 = arith.constant 0 : i32
    %c0_i32_1 = arith.constant 0 : i32
    return %c0_i32, %c0_i32_0 : i32, i32
  }
  func.func @transform_5(%arg0: i32) -> (i32, i32) {
    %c0_i32 = arith.constant 0 : i32
    %c0_i32_0 = arith.constant 0 : i32
    %c0_i32_1 = arith.constant 0 : i32
    return %c0_i32, %c0_i32_0 : i32, i32
  }
  func.func @transform_6(%arg0: i32) -> (i32, i32) {
    %c0_i32 = arith.constant 0 : i32
    %c0_i32_0 = arith.constant 0 : i32
    %c0_i32_1 = arith.constant 0 : i32
    return %c0_i32, %c0_i32_0 : i32, i32
  }
  func.func @transform_7(%arg0: i32) -> (i32, i32) {
    %c0_i32 = arith.constant 0 : i32
    %c0_i32_0 = arith.constant 0 : i32
    return %c0_i32, %arg0 : i32, i32
  }
}

</mosaic_0001>

<bundles_post_ra>
// kernel: tpu_custom_call.1
= control target key start
LH: loop header
LB: loop body
LE: loop exit
PB: predicated region body
PF: predicated region fallthrough
CT: control target
= control target key end

     0   :  { %vm56_vm0 = vcmask 130048   ;;  %v573_v4 = vmov 0   ;;  %s688_s0 = inlined_call_operand.vmem [shape: f32[8,16], index: 0, kind: input, shape index: {}]   ;;  %s689_s1 = inlined_call_operand.vmem [shape: f32[32,16], index: 1, kind: input, shape index: {}]   ;;  %s690_s2 = inlined_call_operand.vmem [shape: f32[32,1], index: 2, kind: input, shape index: {}]   ;;  %s691_s3 = inlined_call_operand.vmem [shape: f32[32,32], index: 3, kind: input, shape index: {}]   ;;  %s692_s4 = inlined_call_operand.vmem [shape: f32[32,1], index: 4, kind: input, shape index: {}]   ;;  %s693_s5 = inlined_call_operand.vmem [shape: f32[2,32], index: 5, kind: input, shape index: {}]   ;;  %s694_s6 = inlined_call_operand.vmem [shape: f32[2,1], index: 6, kind: input, shape index: {}]   ;;  %s695_s7 = inlined_call_operand.hbm [shape: f32[2,8], index: 7, kind: output, shape index: {}]  }
   0x1   :  { %v35_v0 = vld [vmem:[%s688_s0] sm:$0xff]  ;;  %v34_v2 = vld [vmem:[%s690_s2 + $0x18] sm:$0xff]  ;;  %v28_v3 = vld [vmem:[%s689_s1 + $0x8] sm:$0xff]  ;;  %513 = vset.pattern.permute.xlu0 %v573_v4  ;;  %514 = vset.pattern.permute.xlu1 %v573_v4 }
   0x2   :  { %v27_v1 = vld [vmem:[%s689_s1] sm:$0xff]  ;;  %476 = vmatprep.subr.msk.mxu0 %vm56_vm0, %v35_v0  ;;  %v32_v5 = vld [vmem:[%s690_s2 + $0x8] sm:$0xff]  ;;  %v29_v6 = vld [vmem:[%s689_s1 + $0x10] sm:$0xff]  ;;  %53 = vperm.xlu0 %513, %v34_v2  }
   0x3   :  { %478 = vmatprep.mubr.msk.f32.mxu0 %vm56_vm0, %v27_v1  ;;  %477 = vmatpush3.xpose.msk.msra.mxu0 %vm56_vm0, %v35_v0  ;;  %v33_v7 = vld [vmem:[%s690_s2 + $0x10] sm:$0xff] }
   0x4   :  { %43 = vperm.xlu1 %514, %v32_v5  }
   0x5   :  { %12 = vsyncpa [#allocation3], 0  ;;  %v31_v8 = vld [vmem:[%s690_s2] sm:$0xff]  ;;  %v30_v9 = vld [vmem:[%s689_s1 + $0x18] sm:$0xff]  ;;  %vm209_vm1 = vcmask 261120   ;;  %v574_v47 = vmov 0.0  }
   0x6   :  { %479 = vmatmul.mubr.msk.f32.vlgmr.msra.gmra.mxu0 %vm56_vm0, %v28_v3  ;;  %48 = vperm.xlu0 %513, %v33_v7   ;;  %v188_v10 = vld [vmem:[%s692_s4 + $0x18] sm:$0xff]  ;;  %v187_v11 = vld [vmem:[%s692_s4 + $0x10] sm:$0xff]  ;;  %v186_v12 = vld [vmem:[%s692_s4 + $0x8] sm:$0xff]  ;;  %vm575_vm2 = vmmov 0   ;;  %vm421_vm3 = vcmask 57344   ;;  %s576_s9 = smov [#allocation2]  }
   0x7   :  { %481 = vmatprep.mubr.msk.f32.mxu0 %vm56_vm0, %v29_v6  ;;  %v185_v13 = vld [vmem:[%s692_s4] sm:$0xff]  ;;  %v182_v44 = vld [vmem:[%s691_s3 + $0x8] sm:$0xff]  ;;  %v183_v45 = vld [vmem:[%s691_s3 + $0x10] sm:$0xff]  ;;  %498 = vmatprep.subr.mxu0 %v574_v47  ;;  %s431_s10 = sshll.u32 %s576_s9, 4  ;;  %s432_s10 = int_to_ptr.vmem [resolvable:$true] %s431_s10 }
   0x8   :  { %38 = vperm.xlu1 %514, %v31_v8   ;;  %v332_v14 = vld [vmem:[%s694_s6] sm:$0x3]  ;;  %v184_v46 = vld [vmem:[%s691_s3 + $0x18] sm:$0xff]  ;;  %p556_p1 = scmp.lt.s32.totalorder %s432_s10, %s432_s10 }
   0x9   :  { %v181_v15 = vld [vmem:[%s691_s3] sm:$0xff] }
   0xa   :  { %482 = vmatmul.mubr.msk.f32.gmra.mxu0 %vm56_vm0, %v30_v9  ;;  %206 = vperm.xlu0 %513, %v188_v10  }
   0xb   :  { %492 = vmatprep.mubr.msk.f32.mxu1 %vm209_vm1, %v181_v15  ;;  %506 = vmatprep.mubr.msk.f32.mxu0 %vm575_vm2, %v574_v47 }
   0xc   :  { %201 = vperm.xlu1 %514, %v187_v11   ;;  %v331_v11 = vld [vmem:[%s693_s5] sm:$0x3]  ;;  %s551_s5 = scalar_lea.vmem %s432_s10, 32 }
   0xd   :  { %p552_p0 = scmp.ne.s32.totalorder %s432_s10, %s551_s5  ;;  %p557_p2 = scmp.lt.s32.totalorder %s551_s5, %s551_s5 }
   0xe   :  { %196 = vperm.xlu0 %513, %v186_v12  }
   0xf   :  { %p558_p3 = por %p557_p2, %p556_p1 }
  0x10   :  { %191 = vperm.xlu1 %514, %v185_v13  }
  0x11   :  { %p559_p4 = pnand %p558_p3, %p552_p0 }
  0x12   :  { %335 = vperm.xlu0 %513, %v332_v14  }
  0x7d   :  { %v54_v17 = vpop.permute.xlu0 %53 }
  0x7f   :  { %v44_v16 = vpop.permute.xlu1 %43 }
  0x81   :  { %v49_v26 = vpop.permute.xlu0 %48 }
  0x83   :  { %v39_v20 = vpop.permute.xlu1 %38 }
  0x85   :  { %v207_v48 = vpop.permute.xlu0 %206 }
  0x87   :  { %v202_v49 = vpop.permute.xlu1 %201 }
  0x89   :  { %v197_v50 = vpop.permute.xlu0 %196 }
  0x8b   :  { %v192_v53 = vpop.permute.xlu1 %191 }
  0x8d   :  { %v336_v13 = vpop.permute.xlu0 %335 }
  0xc6   :  { %v480_v18 = vpop.f32.mrf.mxu0 }
  0xc7   :  { %v144_v19 = vadd.f32 %v480_v18, %v44_v16 }
  0xc8   :  { %v138_v21 = vpop.f32.mrf.mxu0 }
  0xc9   :  { %v139_v22 = vadd.f32 %v138_v21, %v39_v20  ;;  %v445_v23 = vmul.f32 -1.442695, %v144_v19 }
  0xca   :  { %v483_v24 = vpop.f32.mrf.mxu0 }
  0xcb   :  { %v154_v25 = vadd.f32 %v483_v24, %v54_v17  ;;  %v444_v27 = vmul.f32 -1.442695, %v139_v22  ;;  %515 = vpow2.f32 %v445_v23 }
  0xcc   :  { %v148_v28 = vpop.f32.mrf.mxu0 }
  0xcd   :  { %v447_v29 = vmul.f32 -1.442695, %v154_v25  ;;  %v149_v30 = vadd.f32 %v148_v28, %v49_v26 }
  0xcf   :  { %517 = vpow2.f32 %v447_v29  ;;  %v446_v31 = vmul.f32 -1.442695, %v149_v30 }
  0xd0   :  { %519 = vpow2.f32 %v444_v27 }
  0xd1   :  { %521 = vpow2.f32 %v446_v31 }
  0xd8   :  { %v516_v32 = vpop.eup %515 }
  0xd9   :  { %v170_v37 = vadd.f32 1.0, %v516_v32 }
  0xdc   :  { %v518_v33 = vpop.eup %517 }
  0xdd   :  { %v520_v34 = vpop.eup %519  ;;  %v172_v35 = vadd.f32 1.0, %v518_v33 }
  0xde   :  { %v522_v36 = vpop.eup %521  ;;  %v169_v39 = vadd.f32 1.0, %v520_v34 }
  0xdf   :  { %523 = vrcp.f32 %v172_v35  ;;  %v171_v38 = vadd.f32 1.0, %v522_v36 }
  0xe1   :  { %525 = vrcp.f32 %v171_v38 }
  0xe2   :  { %527 = vrcp.f32 %v170_v37 }
  0xe3   :  { %529 = vrcp.f32 %v169_v39 }
  0xec   :  { %v524_v40 = vpop.eup %523 }
  0xed   :  { %484 = vmatprep.subr.mxu1 %v524_v40 }
  0xee   :  { %v526_v41 = vpop.eup %525  ;;  %485 = vmatpush3.msra.mxu1 %v524_v40 }
  0xef   :  { %486 = vmatprep.subr.mxu1 %v526_v41  ;;  %v528_v42 = vpop.eup %527 }
  0xf0   :  { %487 = vmatpush3.msra.mxu1 %v526_v41  ;;  %v530_v43 = vpop.eup %529 }
  0xf1   :  { %488 = vmatprep.subr.mxu1 %v528_v42 }
  0xf2   :  { %489 = vmatpush3.msra.mxu1 %v528_v42 }
  0xf3   :  { %490 = vmatprep.subr.mxu1 %v530_v43 }
  0xf4   :  { %491 = vmatpush3.msra.mxu1 %v530_v43 }
  0xf5   :  { %493 = vmatmul.mubr.msk.f32.vlgmr.msra.gmra.mxu1 %vm209_vm1, %v182_v44 }
  0xf6   :  { %495 = vmatprep.mubr.msk.f32.mxu1 %vm209_vm1, %v183_v45 }
  0xf9   :  { %496 = vmatmul.mubr.msk.f32.gmra.mxu1 %vm209_vm1, %v184_v46 }
 0x1b5   :  { %v494_v51 = vpop.f32.mrf.mxu1 }
 0x1b6   :  { %v294_v52 = vadd.f32 %v494_v51, %v197_v50 }
 0x1b7   :  { %v288_v54 = vpop.f32.mrf.mxu1 }
 0x1b8   :  { %v289_v55 = vadd.f32 %v288_v54, %v192_v53  ;;  %v453_v56 = vmul.f32 -1.442695, %v294_v52 }
 0x1b9   :  { %v497_v57 = vpop.f32.mrf.mxu1 }
 0x1ba   :  { %v304_v58 = vadd.f32 %v497_v57, %v207_v48  ;;  %v452_v59 = vmul.f32 -1.442695, %v289_v55  ;;  %531 = vpow2.f32 %v453_v56 }
 0x1bb   :  { %v298_v60 = vpop.f32.mrf.mxu1 }
 0x1bc   :  { %v455_v61 = vmul.f32 -1.442695, %v304_v58  ;;  %v299_v62 = vadd.f32 %v298_v60, %v202_v49 }
 0x1be   :  { %533 = vpow2.f32 %v455_v61  ;;  %v454_v63 = vmul.f32 -1.442695, %v299_v62 }
 0x1bf   :  { %535 = vpow2.f32 %v452_v59 }
 0x1c0   :  { %537 = vpow2.f32 %v454_v63 }
 0x1c7   :  { %v532_v0 = vpop.eup %531 }
 0x1c8   :  { %v320_v5 = vadd.f32 1.0, %v532_v0 }
 0x1cb   :  { %v534_v1 = vpop.eup %533 }
 0x1cc   :  { %v536_v2 = vpop.eup %535  ;;  %v322_v3 = vadd.f32 1.0, %v534_v1 }
 0x1cd   :  { %v538_v4 = vpop.eup %537  ;;  %v319_v7 = vadd.f32 1.0, %v536_v2 }
 0x1ce   :  { %539 = vrcp.f32 %v322_v3  ;;  %v321_v6 = vadd.f32 1.0, %v538_v4 }
 0x1d0   :  { %541 = vrcp.f32 %v321_v6 }
 0x1d1   :  { %543 = vrcp.f32 %v320_v5 }
 0x1d2   :  { %545 = vrcp.f32 %v319_v7 }
 0x1db   :  { %v540_v8 = vpop.eup %539 }
 0x1dc   :  { %499 = vmatpush3.msra.mxu0 %v540_v8 }
 0x1dd   :  { %v542_v9 = vpop.eup %541  ;;  %500 = vmatprep.subr.mxu0 %v574_v47 }
 0x1de   :  { %501 = vmatpush3.msra.mxu0 %v542_v9  ;;  %v544_v10 = vpop.eup %543 }
 0x1df   :  { %502 = vmatprep.subr.mxu0 %v574_v47  ;;  %v546_v12 = vpop.eup %545 }
 0x1e0   :  { %503 = vmatpush3.msra.mxu0 %v544_v10 }
 0x1e1   :  { %504 = vmatprep.subr.mxu0 %v574_v47 }
 0x1e2   :  { %505 = vmatpush3.msra.mxu0 %v546_v12 }
 0x1e3   :  { %507 = vmatmul.mubr.msk.f32.vlgmr.msra.gmra.mxu0 %vm209_vm1, %v331_v11 }
 0x2a3   :  { %v407_v14 = vpop.f32.mrf.mxu0 }
 0x2a4   :  { %v408_v15 = vadd.f32 %v407_v14, %v336_v13 }
 0x2a5   :  { %v508_v16 = vpop.f32.mrf.mxu0 }
 0x2a6   :  { %v412_v17 = vrot.slane %v408_v15, 1 }
 0x2a8   :  { %v414_v18 = vsub.f32 %v408_v15, %v412_v17 }
 0x2aa   :  { %v457_v19 = vmul.f32 -1.442695, %v414_v18 }
 0x2ac   :  { %547 = vpow2.f32 %v457_v19 }
 0x2b9   :  { %v548_v20 = vpop.eup %547 }
 0x2ba   :  { %v418_v21 = vadd.f32 1.0, %v548_v20 }
 0x2bc   :  { %549 = vrcp.f32 %v418_v21 }
 0x2c9   :  { %v550_v22 = vpop.eup %549 }
 0x2ca   :  { %422 = vst.msk [vmem:[#allocation2] sm:$0x1] %vm421_vm3, %v550_v22  ;;  %v423_v23 = vsub.f32 1.0, %v550_v22 }
 0x2cc   :  { %424 = vst.msk [vmem:[#allocation2 + $0x1] sm:$0x1] %vm421_vm3, %v423_v23 }
 0x2cd   :  { %562 = shalt.err (!%p559_p4)
}
 0x2ce   :  { %434 = dma.vmem_to_hbm [thread:$0]  %s432_s10, 32, %s695_s7, [#allocation3]  }
 0x2cf   :  { %571 = dma.done.wait [#allocation3], 32  }
 0x2d0   :  { %572 = vsyncadd [#allocation3], 4294967264 }
 0x2d1   :  { %438 = vsyncpa [#allocation3], 1 }

</bundles_post_ra>
